<compile_context>
chip_gen: v5e
topology: v5e:2x2
jax: 0.10.0
libtpu: 0.0.40
codegen_flags: <defaults>
</compile_context>

<pallas_src>
import math
from functools import partial

import jax
import jax.numpy as jnp
from jax.experimental import pallas as pl
from jax.experimental.pallas import tpu as pltpu


# ----------------------------------------------------------------------------
# helpers
# ----------------------------------------------------------------------------
def _round_up(x, m):
    return (x + m - 1) // m * m


def _pick_tile(dim_padded, cap, granule):
    """Largest tile <= cap (multiple of granule) dividing dim_padded."""
    if dim_padded <= cap:
        return dim_padded
    t = cap - cap % granule
    while dim_padded % t:
        t -= granule
    return t


def _pick_div(n, cap):
    """Largest divisor of n that is <= cap (for non-layout grid axes)."""
    t = min(n, cap)
    while n % t:
        t -= 1
    return t


# ----------------------------------------------------------------------------
# Pallas kernels
# ----------------------------------------------------------------------------
def _matmul_kernel(a_ref, w_ref, b_ref, o_ref, acc_ref):
    @pl.when(pl.program_id(2) == 0)
    def _init():
        acc_ref[...] = jnp.zeros_like(acc_ref)

    acc_ref[...] += jnp.dot(a_ref[...].astype(jnp.bfloat16), w_ref[...],
                            preferred_element_type=jnp.float32)

    @pl.when(pl.program_id(2) == pl.num_programs(2) - 1)
    def _fin():
        o_ref[...] = acc_ref[...] + b_ref[...]


def pallas_matmul_bias(a, lin, *, tm_cap=256, tn_cap=256, tk_cap=512):
    """a: (M, K) f32; lin: prepared {"w": (Kp,Np) bf16, "b": (1,Np) f32, "n": N_true}."""
    M, K = a.shape
    Kp, Np = lin["w"].shape
    Mp = _round_up(M, 8)
    a = a.astype(jnp.float32)
    if (Mp, Kp) != (M, K):
        a = jnp.zeros((Mp, Kp), jnp.float32).at[:M, :K].set(a)
    tm = _pick_tile(Mp, tm_cap, 8)
    tn = _pick_tile(Np, tn_cap, 128)
    tk = _pick_tile(Kp, tk_cap, 128)
    out = pl.pallas_call(
        _matmul_kernel,
        out_shape=jax.ShapeDtypeStruct((Mp, Np), jnp.float32),
        grid=(Mp // tm, Np // tn, Kp // tk),
        in_specs=[
            pl.BlockSpec((tm, tk), lambda i, j, k: (i, k)),
            pl.BlockSpec((tk, tn), lambda i, j, k: (k, j)),
            pl.BlockSpec((1, tn), lambda i, j, k: (0, j)),
        ],
        out_specs=pl.BlockSpec((tm, tn), lambda i, j, k: (i, j)),
        scratch_shapes=[pltpu.VMEM((tm, tn), jnp.float32)],
        compiler_params=pltpu.CompilerParams(
            dimension_semantics=("parallel", "parallel", "arbitrary")),
    )(a, lin["w"], lin["b"])
    return out[:M, :lin["n"]]


def _conv1d_kernel(*refs, ksize, t_out, has_res, res_scale):
    if has_res:
        x_ref, w_ref, b_ref, r_ref, o_ref = refs
    else:
        x_ref, w_ref, b_ref, o_ref = refs
    x = x_ref[0].astype(jnp.bfloat16)                 # (Tin, Cin), read once
    acc = jnp.zeros(o_ref.shape[1:], jnp.float32)     # (T, Cout)
    for k in range(ksize):                            # taps accumulated in VMEM (no im2col)
        acc = acc + jnp.dot(x[k:k + t_out, :], w_ref[k],
                            preferred_element_type=jnp.float32)
    acc = acc + b_ref[...]
    if has_res:                                       # fused residual add + 1/sqrt(2)
        acc = (acc + r_ref[0]) * res_scale
    o_ref[0] = acc


def pallas_conv1d(x, conv, residual=None, res_scale=1.0):
    """'same' Conv1d in channels-last layout. x: (B, T, Cin) -> (B, T, Cout)."""
    B, T, Cin = x.shape
    K, pad, Cout = conv["k"], conv["pad"], conv["cout"]
    Tin = T + 2 * pad
    if pad:
        xp = jnp.zeros((B, Tin, Cin), jnp.float32).at[:, pad:pad + T, :].set(x)
    else:
        xp = x.astype(jnp.float32)
    kernel = partial(_conv1d_kernel, ksize=K, t_out=T,
                     has_res=residual is not None, res_scale=res_scale)
    in_specs = [
        pl.BlockSpec((1, Tin, Cin), lambda b: (b, 0, 0)),
        pl.BlockSpec((K, Cin, Cout), lambda b: (0, 0, 0)),
        pl.BlockSpec((1, Cout), lambda b: (0, 0)),
    ]
    args = [xp, conv["w"], conv["b"]]
    if residual is not None:
        in_specs.append(pl.BlockSpec((1, T, Cout), lambda b: (b, 0, 0)))
        args.append(residual.astype(jnp.float32))
    return pl.pallas_call(
        kernel,
        out_shape=jax.ShapeDtypeStruct((B, T, Cout), jnp.float32),
        grid=(B,),
        in_specs=in_specs,
        out_specs=pl.BlockSpec((1, T, Cout), lambda b: (b, 0, 0)),
        compiler_params=pltpu.CompilerParams(dimension_semantics=("parallel",)),
    )(*args)


def _adain_kernel(x_ref, sc_ref, sh_ref, o_ref, *, eps, neg_slope):
    x = x_ref[0]                                      # (T, C) — instance norm over time
    mean = jnp.mean(x, axis=0, keepdims=True)
    d = x - mean
    var = jnp.mean(d * d, axis=0, keepdims=True)
    y = d * jax.lax.rsqrt(var + eps) * sc_ref[0] + sh_ref[0]
    o_ref[0] = jnp.where(y >= 0, y, y * neg_slope)    # fused LeakyReLU


def pallas_adain_act(x, scale, shift, eps=1e-5, neg_slope=0.2):
    """AdaptiveInstanceNorm1d + LeakyReLU; x: (B,T,C), scale/shift: (B,1,C)."""
    B, T, C = x.shape
    return pl.pallas_call(
        partial(_adain_kernel, eps=eps, neg_slope=neg_slope),
        out_shape=jax.ShapeDtypeStruct((B, T, C), jnp.float32),
        grid=(B,),
        in_specs=[pl.BlockSpec((1, T, C), lambda b: (b, 0, 0)),
                  pl.BlockSpec((1, 1, C), lambda b: (b, 0, 0)),
                  pl.BlockSpec((1, 1, C), lambda b: (b, 0, 0))],
        out_specs=pl.BlockSpec((1, T, C), lambda b: (b, 0, 0)),
        compiler_params=pltpu.CompilerParams(dimension_semantics=("parallel",)),
    )(x.astype(jnp.float32), scale.astype(jnp.float32), shift.astype(jnp.float32))


def _layernorm_kernel(x_ref, g_ref, b_ref, o_ref, *, eps, neg_slope):
    x = x_ref[...]                                    # (rows, C) — norm over channels
    mean = jnp.mean(x, axis=1, keepdims=True)
    d = x - mean
    var = jnp.mean(d * d, axis=1, keepdims=True)
    y = d * jax.lax.rsqrt(var + eps) * g_ref[...] + b_ref[...]
    o_ref[...] = jnp.where(y >= 0, y, y * neg_slope)  # fused LeakyReLU


def pallas_layernorm_act(x2d, gamma, beta, eps=1e-5, neg_slope=0.2, row_cap=256):
    """LayerNorm1d (over channels) + LeakyReLU, tiled over rows."""
    R, C = x2d.shape
    Rp = _round_up(R, 8)
    x2d = x2d.astype(jnp.float32)
    if Rp != R:
        x2d = jnp.zeros((Rp, C), jnp.float32).at[:R].set(x2d)
    tr = _pick_tile(Rp, row_cap, 8)
    out = pl.pallas_call(
        partial(_layernorm_kernel, eps=eps, neg_slope=neg_slope),
        out_shape=jax.ShapeDtypeStruct((Rp, C), jnp.float32),
        grid=(Rp // tr,),
        in_specs=[pl.BlockSpec((tr, C), lambda i: (i, 0)),
                  pl.BlockSpec((1, C), lambda i: (0, 0)),
                  pl.BlockSpec((1, C), lambda i: (0, 0))],
        out_specs=pl.BlockSpec((tr, C), lambda i: (i, 0)),
        compiler_params=pltpu.CompilerParams(dimension_semantics=("parallel",)),
    )(x2d, gamma, beta)
    return out[:R]


def _lstm_kernel(xp_ref, whh_ref, o_ref, h_scr, c_scr, *, tt, hp):
    @pl.when(pl.program_id(0) == 0)
    def _init():
        h_scr[...] = jnp.zeros_like(h_scr)
        c_scr[...] = jnp.zeros_like(c_scr)

    whh = whh_ref[...]                                # W_hh resident in VMEM across steps

    def step(t, carry):
        h, c = carry
        gates = xp_ref[t] + jnp.dot(h.astype(jnp.bfloat16), whh,
                                    preferred_element_type=jnp.float32)
        i = jax.nn.sigmoid(gates[:, 0:hp])            # PyTorch gate order i, f, g, o
        f = jax.nn.sigmoid(gates[:, hp:2 * hp])
        g = jnp.tanh(gates[:, 2 * hp:3 * hp])
        o = jax.nn.sigmoid(gates[:, 3 * hp:4 * hp])
        c = f * c + i * g
        h = o * jnp.tanh(c)
        o_ref[t] = h
        return (h, c)

    h, c = jax.lax.fori_loop(0, tt, step, (h_scr[...], c_scr[...]))
    h_scr[...] = h                                    # carry state to the next time chunk
    c_scr[...] = c


def pallas_lstm_scan(xp_t, whh, hp, *, t_chunk_cap=64):
    """xp_t: (T, B, 4*hp) precomputed input projections (gate-aligned lanes)."""
    T, B, G = xp_t.shape
    tt = _pick_div(T, t_chunk_cap)                    # time-chunked: pipelines xp DMA
    return pl.pallas_call(
        partial(_lstm_kernel, tt=tt, hp=hp),
        out_shape=jax.ShapeDtypeStruct((T, B, hp), jnp.float32),
        grid=(T // tt,),
        in_specs=[pl.BlockSpec((tt, B, G), lambda i: (i, 0, 0)),
                  pl.BlockSpec((hp, G), lambda i: (0, 0))],
        out_specs=pl.BlockSpec((tt, B, hp), lambda i: (i, 0, 0)),
        scratch_shapes=[pltpu.VMEM((B, hp), jnp.float32),
                        pltpu.VMEM((B, hp), jnp.float32)],
        compiler_params=pltpu.CompilerParams(dimension_semantics=("arbitrary",)),
    )(xp_t, whh)


# ----------------------------------------------------------------------------
# parameter preparation (transpose / pad / bf16-cast done ONCE at init)
# ----------------------------------------------------------------------------
def prep_linear(w, b=None):
    dout, din = w.shape
    kp, np_ = _round_up(din, 128), _round_up(dout, 128)
    wp = jnp.zeros((kp, np_), jnp.bfloat16).at[:din, :dout].set(w.T.astype(jnp.bfloat16))
    bp = jnp.zeros((1, np_), jnp.float32)
    if b is not None:
        bp = bp.at[0, :dout].set(b.astype(jnp.float32))
    return {"w": wp, "b": bp, "n": dout}


def prep_conv(w, b, padding):
    cout, cin, k = w.shape
    wp = jnp.transpose(w, (2, 1, 0)).astype(jnp.bfloat16)          # (K, Cin, Cout)
    bb = b if b is not None else jnp.zeros((cout,), jnp.float32)
    return {"w": wp, "b": bb.astype(jnp.float32).reshape(1, cout),
            "k": k, "pad": padding, "cout": cout}


def prep_conv1x1(w, b=None):
    return prep_linear(w[:, :, 0], b)


def prep_lstm_dir(w_ih, w_hh, b_ih, b_hh):
    H = w_hh.shape[1]
    din = w_ih.shape[1]
    hp = _round_up(H, 128)
    dinp = _round_up(din, 128)
    w_in = jnp.zeros((dinp, 4 * hp), jnp.bfloat16)
    b_in = jnp.zeros((1, 4 * hp), jnp.float32)
    whh = jnp.zeros((hp, 4 * hp), jnp.bfloat16)
    for g in range(4):                                             # gate-aligned lane layout
        sl = slice(g * H, (g + 1) * H)
        w_in = w_in.at[:din, g * hp:g * hp + H].set(w_ih[sl].T.astype(jnp.bfloat16))
        b_in = b_in.at[0, g * hp:g * hp + H].set((b_ih[sl] + b_hh[sl]).astype(jnp.float32))
        whh = whh.at[:H, g * hp:g * hp + H].set(w_hh[sl].T.astype(jnp.bfloat16))
    return {"in_proj": {"w": w_in, "b": b_in, "n": 4 * hp},
            "whh": whh, "h": H, "hp": hp}


# ----------------------------------------------------------------------------
# layer helpers (channels-last (B, T, C) everywhere)
# ----------------------------------------------------------------------------
def adain_act(x, style, pnorm):
    """AdaptiveInstanceNorm1d + LeakyReLU(0.2)."""
    B, T, C = x.shape
    h = pallas_matmul_bias(style, pnorm)               # (B, 2C) style projection
    gamma, beta = h[:, :C], h[:, C:]
    return pallas_adain_act(x, (1.0 + gamma)[:, None, :], beta[:, None, :])


def layernorm_act(x, gamma, beta):
    B, T, C = x.shape
    return pallas_layernorm_act(x.reshape(B * T, C), gamma, beta).reshape(B, T, C)


def depthwise_convtr_up2(x, p):
    """ConvTranspose1d(C, C, 3, stride=2, padding=1, output_padding=1, groups=C)."""
    # TODO(synk): cheap pointwise glue kept in XLA; could be fused into the conv1 epilogue.
    B, T, C = x.shape
    w = p["w"]
    w0 = w[:, 0, 0][None, None, :]
    w1 = w[:, 0, 1][None, None, :]
    w2 = w[:, 0, 2][None, None, :]
    x_next = jnp.concatenate([x[:, 1:, :], jnp.zeros((B, 1, C), x.dtype)], axis=1)
    y_even = x * w1
    y_odd = x_next * w0 + x * w2
    y = jnp.stack([y_even, y_odd], axis=2).reshape(B, 2 * T, C)
    return y + p["b"][None, None, :]


def lstm_dir(x, p):
    """Single-direction LSTM; x: (B, T, D)."""
    B, T, D = x.shape
    H, hp = p["h"], p["hp"]
    xp = pallas_matmul_bias(x.reshape(B * T, D), p["in_proj"])     # (B*T, 4*hp)
    xp = xp.reshape(B, T, 4 * hp).transpose(1, 0, 2)               # (T, B, 4*hp)
    hs = pallas_lstm_scan(xp, p["whh"], hp)                        # (T, B, hp)
    return hs.transpose(1, 0, 2)[:, :, :H]                         # (B, T, H)


def bilstm(x, p):
    fwd = lstm_dir(x, p["fwd"])
    bwd = lstm_dir(x[:, ::-1, :], p["bwd"])[:, ::-1, :]
    return jnp.concatenate([fwd, bwd], axis=-1)


def residual_block1d(x, style, p, upsample):
    B, T, Cin = x.shape
    skip = x
    if upsample:
        skip = jnp.repeat(skip, 2, axis=1)                         # nearest x2 (glue)
    if p["skip"] is not None:                                      # 1x1 conv = channel matmul
        Bs, Ts, _ = skip.shape
        skip = pallas_matmul_bias(skip.reshape(Bs * Ts, Cin), p["skip"]).reshape(Bs, Ts, -1)
    out = adain_act(x, style, p["norm1"])
    out = pallas_conv1d(out, p["conv1"])
    if upsample:
        # TODO(synk): reference builds ConvTranspose1d with dim_in channels but applies it
        # to a dim_out tensor (shape bug when dim_in != dim_out); we size it for dim_out.
        out = depthwise_convtr_up2(out, p["up"])
    out = adain_act(out, style, p["norm2"])
    # conv2 with fused (out + skip) / sqrt(2)
    return pallas_conv1d(out, p["conv2"], residual=skip, res_scale=1.0 / math.sqrt(2.0))


# ----------------------------------------------------------------------------
# sub-module forwards
# ----------------------------------------------------------------------------
def text_encoder_fwd(p, tokens):
    x = p["embedding"][tokens]                                     # (B, T, H) channels-last
    for layer in p["cnn"]:
        x = pallas_conv1d(x, layer["conv"])                        # K=5, same padding
        x = layernorm_act(x, layer["ln_g"], layer["ln_b"])         # Dropout(0.2) = identity
    return bilstm(x, p["lstm"])                                    # (B, T, H)


def prosody_predictor_fwd(p, text_enc, style):
    B, T, H = text_enc.shape
    S = style.shape[1]
    style_exp = jnp.broadcast_to(style[:, None, :], (B, T, S))
    x = jnp.concatenate([text_enc, style_exp], axis=-1)            # (B, T, H+S)
    x = bilstm(x, p["encoder"])                                    # (B, T, H)
    # F.dropout(0.5) = identity in eval mode
    dur = pallas_matmul_bias(x.reshape(B * T, H), p["duration_proj"]).reshape(B, T, -1)
    dur = jax.nn.softmax(dur, axis=-1)

    up_flags = (False, True, False)

    f0 = x
    for blk, up in zip(p["f0_blocks"], up_flags):
        f0 = residual_block1d(f0, style, blk, up)
    Bt, Tf, Cf = f0.shape
    f0 = pallas_matmul_bias(f0.reshape(Bt * Tf, Cf), p["f0_proj"]).reshape(Bt, Tf)

    energy = x
    for blk, up in zip(p["energy_blocks"], up_flags):
        energy = residual_block1d(energy, style, blk, up)
    energy = pallas_matmul_bias(energy.reshape(Bt * Tf, Cf),
                                p["energy_proj"]).reshape(Bt, Tf)
    return dur, f0, energy


def mel_decoder_fwd(p, x, style, upsample_flags):
    B, T, H = x.shape
    x = pallas_matmul_bias(x.reshape(B * T, H), p["input_proj"]).reshape(B, T, -1)
    for blk, up in zip(p["blocks"], upsample_flags):
        x = residual_block1d(x, style, blk, up)
    B, T2, C = x.shape
    mel = pallas_matmul_bias(x.reshape(B * T2, C), p["output_proj"]).reshape(B, T2, -1)
    return mel.transpose(0, 2, 1)                                  # (B, mel_dim, T2)


def kokoro_forward(params, upsample_flags, text_tokens, speaker_ids):
    text_enc = text_encoder_fwd(params["text_encoder"], text_tokens)
    style = params["voice_packets"][speaker_ids]                   # speaker embedding lookup
    dur, f0, energy = prosody_predictor_fwd(params["prosody"], text_enc, style)
    mel = mel_decoder_fwd(params["mel_decoder"], text_enc, style, upsample_flags)
    return {"mel_pred": mel, "duration_pred": dur, "f0_pred": f0,
            "energy_pred": energy, "style": style}


# ----------------------------------------------------------------------------
# deterministic synthetic weights (weight_norm at init is an identity reparam)
# ----------------------------------------------------------------------------
def init_linear(key, din, dout):
    kw, kb = jax.random.split(key)
    w = jax.random.normal(kw, (dout, din), jnp.float32) / math.sqrt(din)
    b = jax.random.normal(kb, (dout,), jnp.float32) * 0.01
    return prep_linear(w, b)


def init_conv(key, cin, cout, k, padding, bias=True):
    kw, kb = jax.random.split(key)
    w = jax.random.normal(kw, (cout, cin, k), jnp.float32) / math.sqrt(cin * k)
    b = jax.random.normal(kb, (cout,), jnp.float32) * 0.01 if bias else None
    return prep_conv(w, b, padding)


def init_conv1x1(key, cin, cout, bias=True):
    kw, kb = jax.random.split(key)
    w = jax.random.normal(kw, (cout, cin, 1), jnp.float32) / math.sqrt(cin)
    b = jax.random.normal(kb, (cout,), jnp.float32) * 0.01 if bias else None
    return prep_conv1x1(w, b)


def init_lstm_dir(key, din, dh):
    ks = jax.random.split(key, 4)
    s = 1.0 / math.sqrt(dh)
    return prep_lstm_dir(jax.random.normal(ks[0], (4 * dh, din), jnp.float32) * s,
                         jax.random.normal(ks[1], (4 * dh, dh), jnp.float32) * s,
                         jax.random.normal(ks[2], (4 * dh,), jnp.float32) * s,
                         jax.random.normal(ks[3], (4 * dh,), jnp.float32) * s)


def init_bilstm(key, din, dh):
    k1, k2 = jax.random.split(key)
    return {"fwd": init_lstm_dir(k1, din, dh), "bwd": init_lstm_dir(k2, din, dh)}


def init_resblock(key, din, dout, style_dim, upsample):
    ks = jax.random.split(key, 6)
    p = {
        "norm1": init_linear(ks[0], style_dim, 2 * din),
        "norm2": init_linear(ks[1], style_dim, 2 * dout),
        "conv1": init_conv(ks[2], din, dout, 3, 1),
        "conv2": init_conv(ks[3], dout, dout, 3, 1),
        "skip": init_conv1x1(ks[4], din, dout, bias=False) if din != dout else None,
        "up": None,
    }
    if upsample:
        ku1, ku2 = jax.random.split(ks[5])
        p["up"] = {"w": jax.random.normal(ku1, (dout, 1, 3), jnp.float32) / math.sqrt(3),
                   "b": jax.random.normal(ku2, (dout,), jnp.float32) * 0.01}
    return p


def init_kokoro(key, vocab, hidden, style_dim, mel_dim, n_speakers, max_duration):
    keys = jax.random.split(key, 4)

    # --- TextEncoder ---
    te_keys = jax.random.split(keys[0], 5)
    cnn = []
    for i in range(3):
        cnn.append({"conv": init_conv(te_keys[i], hidden, hidden, 5, 2),
                    "ln_g": jnp.ones((1, hidden), jnp.float32),
                    "ln_b": jnp.zeros((1, hidden), jnp.float32)})
    text_encoder = {
        "embedding": jax.random.normal(te_keys[3], (vocab, hidden), jnp.float32) * 0.1,
        "cnn": cnn,
        "lstm": init_bilstm(te_keys[4], hidden, hidden // 2),
    }

    # --- ProsodyPredictor ---
    pp_keys = jax.random.split(keys[1], 10)
    f0_blocks = [init_resblock(pp_keys[0], hidden, hidden, style_dim, False),
                 init_resblock(pp_keys[1], hidden, hidden // 2, style_dim, True),
                 init_resblock(pp_keys[2], hidden // 2, hidden // 2, style_dim, False)]
    en_blocks = [init_resblock(pp_keys[3], hidden, hidden, style_dim, False),
                 init_resblock(pp_keys[4], hidden, hidden // 2, style_dim, True),
                 init_resblock(pp_keys[5], hidden // 2, hidden // 2, style_dim, False)]
    prosody = {
        "encoder": init_bilstm(pp_keys[6], hidden + style_dim, hidden // 2),
        "duration_proj": init_linear(pp_keys[7], hidden, max_duration),
        "f0_blocks": f0_blocks,
        "energy_blocks": en_blocks,
        "f0_proj": init_conv1x1(pp_keys[8], hidden // 2, 1),
        "energy_proj": init_conv1x1(pp_keys[9], hidden // 2, 1),
    }

    # --- MelDecoder ---
    md_keys = jax.random.split(keys[2], 10)
    blocks, ups = [], []
    cur = hidden
    for i in range(8):
        up = i < 3
        nxt = max(cur // 2, mel_dim) if up else cur
        blocks.append(init_resblock(md_keys[i], cur, nxt, style_dim, up))
        ups.append(up)
        cur = nxt
    mel_decoder = {
        "input_proj": init_conv1x1(md_keys[8], hidden, hidden),
        "blocks": blocks,
        "output_proj": init_conv1x1(md_keys[9], cur, mel_dim),
    }

    # --- VoicePacketEmbedding (normal_(0, 0.1)) ---
    voice = jax.random.normal(keys[3], (n_speakers, style_dim), jnp.float32) * 0.1

    params = {"text_encoder": text_encoder, "prosody": prosody,
              "mel_decoder": mel_decoder, "voice_packets": voice}
    return params, tuple(ups)


# ----------------------------------------------------------------------------
if __name__ == "__main__":
    VOCAB, HIDDEN, STYLE, MEL = 32, 32, 16, 8
    N_SPEAKERS, MAX_DURATION = 4, 10
    B, T = 2, 8

    key = jax.random.PRNGKey(0)
    kp, kt = jax.random.split(key)
    params, mel_upsample_flags = init_kokoro(
        kp, VOCAB, HIDDEN, STYLE, MEL, N_SPEAKERS, MAX_DURATION)

    text_tokens = jax.random.randint(kt, (B, T), 0, VOCAB)
    speaker_ids = jnp.array([0, 1], dtype=jnp.int32)

    outputs = kokoro_forward(params, mel_upsample_flags, text_tokens, speaker_ids)
    outputs = jax.block_until_ready(outputs)

    assert outputs["mel_pred"].shape == (B, MEL, 8 * T)
    assert outputs["duration_pred"].shape == (B, T, MAX_DURATION)
    assert outputs["f0_pred"].shape == (B, 2 * T)
    assert outputs["energy_pred"].shape == (B, 2 * T)
    assert outputs["style"].shape == (B, STYLE)
    assert bool(jnp.all(jnp.isfinite(outputs["mel_pred"])))
    assert bool(jnp.all(jnp.isfinite(outputs["duration_pred"])))
    assert bool(jnp.all(jnp.isfinite(outputs["f0_pred"])))
    assert bool(jnp.all(jnp.isfinite(outputs["energy_pred"])))

    print("KERNEL_OK")
</pallas_src>

<mosaic_0001>
module attributes {stable_mosaic.version = 11 : i64} {
  func.func @_conv1d_kernel(%arg0: i32, %arg1: memref<1x12x32xf32, #tpu.memory_space<vmem>>, %arg2: memref<5x32x32xbf16, #tpu.memory_space<vmem>>, %arg3: memref<1x32xf32, #tpu.memory_space<vmem>>, %arg4: memref<1x8x32xf32, #tpu.memory_space<vmem>>) attributes {dimension_semantics = [#tpu.dimension_semantics<parallel>], iteration_bounds = array<i64: 2>, scalar_prefetch = 0 : i64, scratch_operands = 0 : i64, tpu.core_type = #tpu.core_type<tc>, window_params = [{transform_indices = @transform_0, window_bounds = array<i64: 1, 12, 32>}, {pipeline_mode = #tpu.pipeline_mode<synchronous>, transform_indices = @transform_1, window_bounds = array<i64: 5, 32, 32>}, {pipeline_mode = #tpu.pipeline_mode<synchronous>, transform_indices = @transform_2, window_bounds = array<i64: 1, 32>}, {transform_indices = @transform_3, window_bounds = array<i64: 1, 8, 32>}]} {
    %c0 = arith.constant 0 : index
    %c0_0 = arith.constant 0 : index
    %c0_1 = arith.constant 0 : index
    %0 = vector.load %arg1[%c0, %c0_0, %c0_1] : memref<1x12x32xf32, #tpu.memory_space<vmem>>, vector<1x12x32xf32>
    %1 = vector.shape_cast %0 : vector<1x12x32xf32> to vector<12x32xf32>
    %2 = arith.truncf %1 : vector<12x32xf32> to vector<12x32xbf16>
    %cst = arith.constant 0.000000e+00 : f32
    %3 = vector.broadcast %cst : f32 to vector<8x32xf32>
    %4 = vector.extract_strided_slice %2 {offsets = [0, 0], sizes = [8, 32], strides = [1, 1]} : vector<12x32xbf16> to vector<8x32xbf16>
    %c0_2 = arith.constant 0 : index
    %c0_3 = arith.constant 0 : index
    %c0_4 = arith.constant 0 : index
    %5 = vector.load %arg2[%c0_2, %c0_3, %c0_4] : memref<5x32x32xbf16, #tpu.memory_space<vmem>>, vector<1x32x32xbf16>
    %6 = vector.shape_cast %5 : vector<1x32x32xbf16> to vector<32x32xbf16>
    %cst_5 = arith.constant dense<0.000000e+00> : vector<8x32xf32>
    %7 = tpu.matmul %4, %6, %cst_5 {dimension_numbers = #tpu.dot_dimension_numbers<[1], [0], [0], [1], [0, 0, 1, 1], [], []>} : vector<8x32xbf16>, vector<32x32xbf16>, vector<8x32xf32> -> vector<8x32xf32>
    %8 = arith.addf %3, %7 : vector<8x32xf32>
    %9 = vector.extract_strided_slice %2 {offsets = [1, 0], sizes = [8, 32], strides = [1, 1]} : vector<12x32xbf16> to vector<8x32xbf16>
    %c1 = arith.constant 1 : index
    %c0_6 = arith.constant 0 : index
    %c0_7 = arith.constant 0 : index
    %10 = vector.load %arg2[%c1, %c0_6, %c0_7] : memref<5x32x32xbf16, #tpu.memory_space<vmem>>, vector<1x32x32xbf16>
    %11 = vector.shape_cast %10 : vector<1x32x32xbf16> to vector<32x32xbf16>
    %cst_8 = arith.constant dense<0.000000e+00> : vector<8x32xf32>
    %12 = tpu.matmul %9, %11, %cst_8 {dimension_numbers = #tpu.dot_dimension_numbers<[1], [0], [0], [1], [0, 0, 1, 1], [], []>} : vector<8x32xbf16>, vector<32x32xbf16>, vector<8x32xf32> -> vector<8x32xf32>
    %13 = arith.addf %8, %12 : vector<8x32xf32>
    %14 = vector.extract_strided_slice %2 {offsets = [2, 0], sizes = [8, 32], strides = [1, 1]} : vector<12x32xbf16> to vector<8x32xbf16>
    %c2 = arith.constant 2 : index
    %c0_9 = arith.constant 0 : index
    %c0_10 = arith.constant 0 : index
    %15 = vector.load %arg2[%c2, %c0_9, %c0_10] : memref<5x32x32xbf16, #tpu.memory_space<vmem>>, vector<1x32x32xbf16>
    %16 = vector.shape_cast %15 : vector<1x32x32xbf16> to vector<32x32xbf16>
    %cst_11 = arith.constant dense<0.000000e+00> : vector<8x32xf32>
    %17 = tpu.matmul %14, %16, %cst_11 {dimension_numbers = #tpu.dot_dimension_numbers<[1], [0], [0], [1], [0, 0, 1, 1], [], []>} : vector<8x32xbf16>, vector<32x32xbf16>, vector<8x32xf32> -> vector<8x32xf32>
    %18 = arith.addf %13, %17 : vector<8x32xf32>
    %19 = vector.extract_strided_slice %2 {offsets = [3, 0], sizes = [8, 32], strides = [1, 1]} : vector<12x32xbf16> to vector<8x32xbf16>
    %c3 = arith.constant 3 : index
    %c0_12 = arith.constant 0 : index
    %c0_13 = arith.constant 0 : index
    %20 = vector.load %arg2[%c3, %c0_12, %c0_13] : memref<5x32x32xbf16, #tpu.memory_space<vmem>>, vector<1x32x32xbf16>
    %21 = vector.shape_cast %20 : vector<1x32x32xbf16> to vector<32x32xbf16>
    %cst_14 = arith.constant dense<0.000000e+00> : vector<8x32xf32>
    %22 = tpu.matmul %19, %21, %cst_14 {dimension_numbers = #tpu.dot_dimension_numbers<[1], [0], [0], [1], [0, 0, 1, 1], [], []>} : vector<8x32xbf16>, vector<32x32xbf16>, vector<8x32xf32> -> vector<8x32xf32>
    %23 = arith.addf %18, %22 : vector<8x32xf32>
    %24 = vector.extract_strided_slice %2 {offsets = [4, 0], sizes = [8, 32], strides = [1, 1]} : vector<12x32xbf16> to vector<8x32xbf16>
    %c4 = arith.constant 4 : index
    %c0_15 = arith.constant 0 : index
    %c0_16 = arith.constant 0 : index
    %25 = vector.load %arg2[%c4, %c0_15, %c0_16] : memref<5x32x32xbf16, #tpu.memory_space<vmem>>, vector<1x32x32xbf16>
    %26 = vector.shape_cast %25 : vector<1x32x32xbf16> to vector<32x32xbf16>
    %cst_17 = arith.constant dense<0.000000e+00> : vector<8x32xf32>
    %27 = tpu.matmul %24, %26, %cst_17 {dimension_numbers = #tpu.dot_dimension_numbers<[1], [0], [0], [1], [0, 0, 1, 1], [], []>} : vector<8x32xbf16>, vector<32x32xbf16>, vector<8x32xf32> -> vector<8x32xf32>
    %28 = arith.addf %23, %27 : vector<8x32xf32>
    %c0_18 = arith.constant 0 : index
    %c0_19 = arith.constant 0 : index
    %29 = vector.load %arg3[%c0_18, %c0_19] : memref<1x32xf32, #tpu.memory_space<vmem>>, vector<1x32xf32>
    %30 = vector.broadcast %29 : vector<1x32xf32> to vector<8x32xf32>
    %31 = arith.addf %28, %30 : vector<8x32xf32>
    %c0_20 = arith.constant 0 : index
    %c0_21 = arith.constant 0 : index
    %c0_22 = arith.constant 0 : index
    %32 = vector.load %arg4[%c0_20, %c0_21, %c0_22] : memref<1x8x32xf32, #tpu.memory_space<vmem>>, vector<1x8x32xf32>
    %33 = vector.shape_cast %32 : vector<1x8x32xf32> to vector<8x32xf32>
    %34 = vector.shape_cast %31 : vector<8x32xf32> to vector<1x8x32xf32>
    tpu.vector_store %arg4[%c0_20, %c0_21, %c0_22], %34 {strides = array<i32>} : memref<1x8x32xf32, #tpu.memory_space<vmem>>, vector<1x8x32xf32>,
    return
  }
  func.func @transform_0(%arg0: i32) -> (i32, i32, i32) {
    %c0_i32 = arith.constant 0 : i32
    %c0_i32_0 = arith.constant 0 : i32
    %c0_i32_1 = arith.constant 0 : i32
    return %arg0, %c0_i32, %c0_i32_0 : i32, i32, i32
  }
  func.func @transform_1(%arg0: i32) -> (i32, i32, i32) {
    %c0_i32 = arith.constant 0 : i32
    %c0_i32_0 = arith.constant 0 : i32
    %c0_i32_1 = arith.constant 0 : i32
    %c0_i32_2 = arith.constant 0 : i32
    return %c0_i32, %c0_i32_0, %c0_i32_1 : i32, i32, i32
  }
  func.func @transform_2(%arg0: i32) -> (i32, i32) {
    %c0_i32 = arith.constant 0 : i32
    %c0_i32_0 = arith.constant 0 : i32
    %c0_i32_1 = arith.constant 0 : i32
    return %c0_i32, %c0_i32_0 : i32, i32
  }
  func.func @transform_3(%arg0: i32) -> (i32, i32, i32) {
    %c0_i32 = arith.constant 0 : i32
    %c0_i32_0 = arith.constant 0 : i32
    %c0_i32_1 = arith.constant 0 : i32
    return %arg0, %c0_i32, %c0_i32_0 : i32, i32, i32
  }
}

</mosaic_0001>

<bundles_post_ra>
// kernel: tpu_custom_call.1
= control target key start
LH: loop header
LB: loop body
LE: loop exit
PB: predicated region body
PF: predicated region fallthrough
CT: control target
= control target key end

     0   :  { %8 = vsyncpa [#allocation3], 0  ;;  %s816_s0 = inlined_call_operand.vmem [shape: f32[2,12,32], index: 0, kind: input, shape index: {}]   ;;  %s817_s1 = inlined_call_operand.hbm [shape: bf16[5,32,32], index: 1, kind: input, shape index: {}]   ;;  %s818_s2 = inlined_call_operand.vmem [shape: f32[1,32], index: 2, kind: input, shape index: {}]   ;;  %s819_s3 = inlined_call_operand.hbm [shape: f32[2,8,32], index: 3, kind: output, shape index: {}]  }
   0x1   :  { %9 = vsyncpa [#allocation4], 0 }
   0x2   :  { %11 = vsyncpa [#allocation4 + $0x1], 0  ;;  %s712_s12 = smov 0   ;;  %s714_s13 = smov 0  }
   0x3   :  { %s716_s14 = smov 0   ;;  %s718_s15 = smov 0  }
   0x4 LB: > { %s733_s16 = sadd.s32 4294967295, %s687_s15   ;;  %s469_s17 = sadd.s32 4294967294, %s687_s15   ;;  %s687_s15 = sphi %s718_s15, %s825_s15   ;;  %s683_s14 = sphi %s716_s14, %s824_s14   ;;  %s679_s13 = sphi %s714_s13, %s823_s13   ;;  %s675_s12 = sphi %s712_s12, %s822_s12  }
   0x5   : > { %s737_s18 = sadd.s32 1, %s687_s15   ;;  %s92_s19 = sadd.s32 1, %s683_s14 }
   0x6   : > { %s89_s20 = ssub.s32 %s687_s15, %s737_s18  ;;  %p102_p0 = scmp.ne.s32.totalorder %s683_s14, %s679_s13 }
   0x7   : > { %p90_p1 = scmp.eq.s32.totalorder %s89_s20, 0  ;;  %p103_p2 = scmp.eq.s32.totalorder %s733_s16, 1 }
   0x8   : > { %p108_p3 = scmp.ne.s32.totalorder %s679_s13, %s675_s12  ;;  %p109_p4 = scmp.eq.s32.totalorder %s469_s17, 1 }
   0x9   : > { %s748_s21 = scalar_select %p90_p1, %s683_s14, %s92_s19  }
   0xa   : > { %p750_p5 = por %p103_p2, %p102_p0  ;;  %p754_p6 = por %p109_p4, %p108_p3 }
   0xb   : > { %p470_p7 = scmp.ge.s32.totalorder %s687_s15, 1  ;;  %p116_p8 = scmp.lt.s32.totalorder %s687_s15, 3 }
   0xc   : > { %p552_p9 = scmp.eq.s32.totalorder %s733_s16, 0  ;;  %s127_s26 = sshll.u32 %s817_s1, 4  ;;  %s128_s26 = int_to_ptr.hbm [resolvable:$true] %s127_s26 }
   0xd   : > { %p117_p10 = pnand %p470_p7, %p116_p8  ;;  %s689_s27 = smov [#allocation2]  }
   0xe   : > { %s129_s28 = sshll.u32 %s689_s27, 4  ;;  %s690_s29 = smov 64   ;;  %s130_s28 = int_to_ptr.vmem [resolvable:$true] %s129_s28 }
   0xf   : > { %p544_p11 = pneg %p117_p10  ;;  %s691_s30 = smov 4  }
  0x10   : > { %156 = sbr.rel (%p117_p10) target bundleno = 191 (0xbf), region = 32 }
  0x11   : > { %p545_p12 = pnand %p552_p9, %p544_p11 }
  0x13   : > { %547 = dma.hbm_to_vmem [thread:$0]  (!%p545_p12), %s128_s26, 1280, %s130_s28, [#allocation3], %s690_s29, %s690_s29, %s691_s30  }
  0x15   : > { %666 = dma.done.wait (%p552_p9), [#allocation3], 1280  }
  0x16   : > { %668 = vsyncadd (%p552_p9), [#allocation3], 4294966016  ;;  %p181_p13 = scmp.lt.s32.totalorder %s733_s16, 1  ;;  %v533_v0 = vld [vmem:[#allocation2 + $0x28] sm:$0xff]  ;;  %v531_v1 = vld [vmem:[#allocation2 + $0x18] sm:$0xff]  ;;  %vm224_vm0 = vcmask 261120  }
  0x17   : > { %v529_v2 = vld [vmem:[#allocation2 + $0x8] sm:$0xff]  ;;  %v535_v3 = vld [vmem:[#allocation2 + $0x38] sm:$0xff]  ;;  %v532_v4 = vld [vmem:[#allocation2 + $0x20] sm:$0xff]  ;;  %296 = vmatpush.bf16.msra.mxu2 %v533_v0  ;;  %234 = vmatpush.bf16.msra.mxu0 %v531_v1  ;;  %s178_s9 = sand.u32 1, %s679_s13   ;;  %s524_s11 = sshll.u32 %s733_s16, 3 }
  0x18   : > { %s182_s4 = scalar_select %p181_p13, %s733_s16, 1  ;;  %v530_v5 = vld [vmem:[#allocation2 + $0x10] sm:$0xff]  ;;  %262 = vmatpush.bf16.msra.mxu1 %v529_v2  ;;  %333 = vmatpush.bf16.msra.mxu3 %v535_v3  ;;  %v528_v8 = vld [vmem:[#allocation2] sm:$0xff]  ;;  %v537_v12 = vld [vmem:[#allocation2 + $0x48] sm:$0xff] }
  0x19   : > { %v534_v11 = vld [vmem:[#allocation2 + $0x30] sm:$0xff]  ;;  %v536_v16 = vld [vmem:[#allocation2 + $0x40] sm:$0xff]  ;;  %s475_s10 = sshll.u32 %s178_s9, 3  ;;  %s393_s20 = scalar_lea.hbm %s819_s3, %s524_s11 }
  0x1a   : > { %s527_s5 = sshll.u32 %s182_s4, 4  ;;  %v590_v37 = vld [vmem:[%s818_s2] ss:$0 sm:$0xff]  ;;  %s180_s26 = scalar_lea.vmem [#allocation5], %s475_s10 }
  0x1b   : > { %s185_s8 = scalar_lea.vmem %s816_s0, %s527_s5  ;;  %297 = vmatpush.bf16.msra.mxu2 %v532_v4  ;;  %235 = vmatpush.bf16.msra.mxu0 %v530_v5  ;;  %s395_s27 = sshll.u32 %s180_s26, 4  ;;  %s396_s27 = int_to_ptr.vmem [resolvable:$true] %s395_s27 }
  0x1c   : > { %v187_v6 = vld [vmem:[%s185_s8] sm:$0xff]  ;;  %v188_v7 = vld [vmem:[%s185_s8 + $0x8] sm:$0xf]  ;;  %263 = vmatpush.bf16.msra.mxu1 %v528_v8  ;;  %334 = vmatpush.bf16.msra.mxu3 %v534_v11  ;;  %s397_s28 = sshll.u32 %s393_s20, 4  ;;  %s383_s16 = scalar_lea.sflag [#allocation4], %s178_s9  ;;  %s398_s28 = int_to_ptr.hbm [resolvable:$true] %s397_s28 }
  0x1d   : > { %v189_v9 = vpack.c.bf16 %v187_v6, %v187_v6  ;;  %v190_v10 = vpack.c.bf16 %v188_v7, %v188_v7  ;;  %s635_s29 = sshra.s32 %s398_s28, 4  ;;  %s641_s6 = scalar_lea.hbm %s819_s3, 16  ;;  %s636_s29 = int_to_ptr.hbm [resolvable:$true] %s635_s29 }
  0x1e   : > { %s637_s30 = scalar_lea.hbm %s636_s29, 8  ;;  %p642_p3 = scmp.lt.s32.totalorder %s636_s29, %s819_s3 }
  0x1f   : > { %v202_v13 = vunpack.c.l.b16 %v189_v9  ;;  %v203_v14 = vunpack.c.l.b16 %v190_v10  ;;  %368 = vmatpush.bf16.msrb.mxu0 %v537_v12  ;;  %495 = vmatmul.msk.bf16.vlgmr.msra.gmra.mxu1 %vm224_vm0, %v189_v9  ;;  %p638_p0 = scmp.ne.s32.totalorder %s636_s29, %s637_s30  ;;  %p643_p4 = scmp.lt.s32.totalorder %s641_s6, %s637_s30 }
  0x21   : > { %v204_v15 = vpack.c.b16 %v203_v14, %v202_v13  ;;  %p639_p1 = pnand %p638_p0, %p750_p5  ;;  %p644_p7 = por %p643_p4, %p642_p3 }
  0x23   : > { %v274_v17 = vrot.slane %v204_v15, 1  ;;  %v206_v18 = vshrl.u32 %v204_v15, 16  ;;  %v208_v19 = vshll.u32 %v204_v15, 16  ;;  %369 = vmatpush.bf16.msrb.mxu0 %v536_v16  ;;  %v346_v25 = vrot.slane %v204_v15, 2  ;;  %p640_p2 = pneg %p639_p1 }
  0x25   : > { %504 = vmatmul.msk.bf16.vlgmr.msra.gmra.mxu2 %vm224_vm0, %v274_v17  ;;  %v210_v20 = vrot.slane %v208_v19, 1  ;;  %v309_v21 = vrot.slane %v206_v18, 1  ;;  %v310_v22 = vrot.slane %v208_v19, 2  ;;  %p645_p8 = pnand %p644_p7, %p640_p2 }
  0x27   : > { %v211_v23 = vor.u32 %v210_v20, %v206_v18  ;;  %v311_v24 = vor.u32 %v310_v22, %v309_v21 }
  0x29   : > { %486 = vmatmul.msk.bf16.vlgmr.msra.gmra.mxu0 %vm224_vm0, %v211_v23  ;;  %513 = vmatmul.msk.bf16.vlgmr.msra.gmra.mxu3 %vm224_vm0, %v311_v24 }
  0x39   : > { %522 = vmatmul.msk.bf16.vlgmr.msrb.gmra.mxu0 %vm224_vm0, %v346_v25 }
  0x9c   : > { %v265_v26 = vpop.f32.mrf.mxu1 }
  0xa4   : > { %v267_v29 = vpop.f32.mrf.mxu1 }
  0xa6   : > { %v237_v27 = vpop.f32.mrf.mxu0 }
  0xa7   : > { %v266_v32 = vadd.f32 %v265_v26, %v237_v27 }
  0xa8   : > { %v299_v28 = vpop.f32.mrf.mxu2 }
  0xa9   : > { %v303_v34 = vadd.f32 %v299_v28, %v266_v32 }
  0xac   : > { %v336_v30 = vpop.f32.mrf.mxu3 }
  0xad   : > { %v340_v36 = vadd.f32 %v336_v30, %v303_v34 }
  0xae   : > { %v239_v31 = vpop.f32.mrf.mxu0 }
  0xb0   : > { %v301_v33 = vpop.f32.mrf.mxu2 }
  0xb4   : > { %v338_v35 = vpop.f32.mrf.mxu3 }
  0xb6   : > { %v371_v38 = vpop.f32.mrf.mxu0 }
  0xb7   : > { %v375_v39 = vadd.f32 %v371_v38, %v340_v36 }
  0xb9   : > { %v380_v40 = vadd.f32 %v590_v37, %v375_v39 }
  0xbb   : > { %381 = vst.msk [vmem:[%s180_s26] sm:$0xff] %vm224_vm0, %v380_v40 }
  0xbc   : > { %648 = shalt.err (!%p645_p8)
}
  0xbd   : > { %542 = dma.vmem_to_hbm [thread:$0]  (%p750_p5), %s396_s27, 128, %s398_s28, %s383_s16  }
  0xbe   : > { %v373_v41 = vpop.f32.mrf.mxu0 }
  0xbf PF: > { %p554_p9 = scmp.ge.s32.totalorder %s687_s15, 2  ;;  %s409_s9 = sand.u32 1, %s675_s12  }
  0xc0   : > { %s410_s10 = scalar_lea.sflag [#allocation4], %s409_s9 }
  0xc1   : > { %p549_p10 = pnand %p554_p9, %p754_p6 }
  0xc3   : > { %p550_p11 = pneg %p549_p10 }
  0xc5   : > { %670 = dma.done.wait (%p550_p11), %s410_s10, 128  }
  0xc6   : > { %672 = vsyncadd (%p550_p11), %s410_s10, 4294967168  ;;  %p14_p12 = scmp.ge.s32.totalorder %s737_s18, 4   ;;  %s822_s12 = smov %s679_s13 }
  0xc7   : > { %s823_s13 = smov %s683_s14  ;;  %s824_s14 = smov %s748_s21 }
  0xc8   : > { %s825_s15 = smov %s737_s18  ;;  %16 = sbr.rel (!%p14_p12) target bundleno = 4 (0x4), region = 76 }
  0xcd   :  { %416 = vsyncpa [#allocation3], 1 }
  0xce   :  { %418 = vsyncpa [#allocation3 + $0x1], 1 }
  0xcf   :  { %419 = vsyncpa [#allocation4], 1 }
  0xd0   :  { %421 = vsyncpa [#allocation4 + $0x1], 1 }

</bundles_post_ra>
